<compile_context>
chip_gen: v7x
topology: tpu7x:2x2x1
jax: 0.10.0
libtpu: 0.0.40
codegen_flags: <defaults>
</compile_context>

<pallas_src>
import jax
import jax.numpy as jnp
from jax import lax
from jax.experimental import pallas as pl
from jax.experimental.pallas import tpu as pltpu


def _round_up(v, m):
    return -(-v // m) * m


def _qk_gram_kernel(x_ref, w1_ref, o_ref):
    """grid = (token-chunk c, token-tile n [reduction]).

    x_ref : (tile_n, H)    activation tile (native dtype)
    w1_ref: (H, 2R)        both branch projections, concatenated along lanes
    o_ref : (1, 2R, 2R)    fused Gram accumulator (resident across n)
    """
    @pl.when(pl.program_id(1) == 0)
    def _():
        o_ref[...] = jnp.zeros_like(o_ref)

    # One fused projection for both branches: (tile_n, 2R) on the MXU, f32 acc.
    t = jnp.dot(x_ref[...], w1_ref[...], preferred_element_type=jnp.float32)

    # Gram accumulation  G += T^T @ T  (contract the large token axis).
    # NOTE: contracting dim 0 of both operands lowers to a transposed-LHS
    # MXU matmul; verified form equivalent to einsum('nr,ns->rs').
    dn = (((0,), (0,)), ((), ()))
    o_ref[0] += lax.dot_general(t, t, dn, preferred_element_type=jnp.float32)


def qk_predictor_scores(x, w1, w2, *, tile_n=512, num_chunks=1,
                        core_parallel=False):
    """qk scores = ||y0||_col * ||y1||_col with y_b = (x @ w1[b]) @ w2[b]."""
    H = x.shape[-1]
    R = w1.shape[-1]
    two_r = 2 * R

    x2d = x.reshape(-1, H)
    # Guarded dtype handling: keep weights wide for narrow activation dtypes.
    if x2d.dtype not in (jnp.dtype(jnp.float32), jnp.dtype(jnp.bfloat16)):
        x2d = x2d.astype(jnp.bfloat16)
    w1cat = jnp.concatenate([w1[0], w1[1]], axis=1).astype(x2d.dtype)  # (H, 2R)
    N = x2d.shape[0]

    SUB = 16  # sublane multiple (covers bf16 packing)
    num_chunks = max(1, int(num_chunks))
    tile_n = max(SUB, (int(tile_n) // SUB) * SUB)
    per_chunk = pl.cdiv(N, num_chunks * SUB) * SUB       # tokens/chunk, SUB-aligned
    tile_n = min(tile_n, per_chunk)
    tiles_per_chunk = pl.cdiv(N, num_chunks * tile_n)
    n_pad = num_chunks * tiles_per_chunk * tile_n
    if n_pad != N:
        # Zero rows contribute nothing to the Gram accumulation.
        x2d = jnp.pad(x2d, ((0, n_pad - N), (0, 0)))

    # ---- explicit VMEM budget from the real footprint ----------------------
    itm = x2d.dtype.itemsize
    x_buf = tile_n * _round_up(H, 128) * itm              # one x tile in VMEM
    w1_buf = _round_up(H, SUB) * 128 * itm                # 2R lane-padded to 128
    out_buf = num_chunks * _round_up(two_r, SUB) * 128 * 4
    vmem_budget = max(4 << 20, 2 * x_buf + w1_buf + 2 * out_buf + (2 << 20))

    # ---- advisory cost estimate --------------------------------------------
    flops = 2 * n_pad * H * two_r + 2 * n_pad * two_r * two_r
    bytes_accessed = (n_pad * H * itm + H * two_r * itm
                      + num_chunks * two_r * two_r * 4)

    chunk_sem = (pltpu.CORE_PARALLEL if (core_parallel and num_chunks > 1)
                 else pltpu.PARALLEL)

    gram = pl.pallas_call(
        _qk_gram_kernel,
        out_shape=jax.ShapeDtypeStruct((num_chunks, two_r, two_r), jnp.float32),
        grid_spec=pltpu.PrefetchScalarGridSpec(
            num_scalar_prefetch=0,
            grid=(num_chunks, tiles_per_chunk),            # reduction axis last
            in_specs=[
                pl.BlockSpec((tile_n, H),
                             lambda c, n: (c * tiles_per_chunk + n, 0)),
                # grid-invariant weights: single-buffered
                pl.BlockSpec((H, two_r), lambda c, n: (0, 0),
                             pipeline_mode=pl.Buffered(1)),
            ],
            out_specs=pl.BlockSpec((1, two_r, two_r), lambda c, n: (c, 0, 0)),
        ),
        compiler_params=pltpu.CompilerParams(
            dimension_semantics=(chunk_sem, pltpu.ARBITRARY),
            vmem_limit_bytes=int(vmem_budget)),
        cost_estimate=pl.CostEstimate(flops=int(flops), transcendentals=0,
                                      bytes_accessed=int(bytes_accessed)),
    )(x2d, w1cat)

    gram = gram.sum(axis=0)                                # (2R, 2R)
    gram2 = jnp.stack([gram[:R, :R], gram[R:, R:]])        # (2, R, R) diag blocks

    w2f = w2.astype(jnp.float32)
    # sum_n y[b,n,j]^2 = w2[b,:,j]^T @ gram2[b] @ w2[b,:,j]
    sumsq = jnp.sum(
        jnp.einsum("brs,bsh->brh", gram2, w2f,
                   precision=lax.Precision.HIGHEST) * w2f, axis=1)   # (2, H)
    norms = jnp.sqrt(jnp.maximum(sumsq, 0.0))              # == norm(dim=1)
    return norms[0] * norms[1]


def qk_predictor_forward(x, w1, w2, sparsity, *, tile_n=512, num_chunks=1,
                         core_parallel=False):
    """JAX equivalent of QKPredictor.forward(x, sparsity) -> top-k indices."""
    H = x.shape[-1]
    qk = qk_predictor_scores(x, w1, w2, tile_n=tile_n, num_chunks=num_chunks,
                             core_parallel=core_parallel)
    # The PyTorch source reads `qk.shape[-1]` one line early; the intended
    # value is hidden_size.
    k = int(H * (1 - sparsity))
    # TODO(synk): top-k index selection has no clean Pallas TPU equivalent; use lax.top_k.
    _, idx = lax.top_k(qk, k)
    return idx.reshape(-1)


def qk_predictor_reference(x, w1, w2, sparsity):
    """Pure-JAX reference mirroring the PyTorch forward (direct formulation)."""
    H = x.shape[-1]
    n = x.reshape(-1, H).shape[0]
    xf = jnp.broadcast_to(x.reshape(1, -1, H).astype(jnp.float32), (2, n, H))
    y = jnp.einsum("bnh,bhr->bnr", xf, w1.astype(jnp.float32),
                   precision=lax.Precision.HIGHEST)
    y = jnp.einsum("bnr,brh->bnh", y, w2.astype(jnp.float32),
                   precision=lax.Precision.HIGHEST)
    norms = jnp.linalg.norm(y, axis=1)                     # (2, H)
    qk = norms[0] * norms[1]
    k = int(H * (1 - sparsity))
    return lax.top_k(qk, k)[1].reshape(-1), qk


if __name__ == "__main__":
    hidden_size, rank = 32, 8
    batch, seq = 2, 8                                      # N = batch * seq = 16
    sparsity = 0.5

    key = jax.random.PRNGKey(0)
    kx, k1, k2 = jax.random.split(key, 3)
    x = jax.random.normal(kx, (batch, seq, hidden_size), dtype=jnp.float32)
    w1 = jax.random.normal(k1, (2, hidden_size, rank), dtype=jnp.float32)
    w2 = jax.random.normal(k2, (2, rank, hidden_size), dtype=jnp.float32)

    idx = jax.block_until_ready(qk_predictor_forward(x, w1, w2, sparsity))
    qk = jax.block_until_ready(qk_predictor_scores(x, w1, w2))

    idx_ref, qk_ref = qk_predictor_reference(x, w1, w2, sparsity)
    idx_ref = jax.block_until_ready(idx_ref)
    qk_ref = jax.block_until_ready(qk_ref)

    k = int(hidden_size * (1 - sparsity))
    assert idx.shape == idx_ref.shape == (k,)
    # Scores must match the direct formulation closely ...
    assert bool(jnp.allclose(qk, qk_ref, rtol=2e-2, atol=1e-3)), (qk, qk_ref)
    # ... and the selected feature set must be identical (ordering among
    # near-equal scores may legitimately differ between formulations).
    assert bool(jnp.all(jnp.sort(idx) == jnp.sort(idx_ref))), (idx, idx_ref)

    print("KERNEL_OK")
</pallas_src>

<mosaic_0001>
module attributes {stable_mosaic.version = 11 : i64} {
  func.func @_qk_gram_kernel(%arg0: i32, %arg1: i32, %arg2: memref<16x32xf32, #tpu.memory_space<vmem>>, %arg3: memref<32x16xf32, #tpu.memory_space<vmem>>, %arg4: memref<1x16x16xf32, #tpu.memory_space<vmem>>) attributes {dimension_semantics = [#tpu.dimension_semantics<parallel>, #tpu.dimension_semantics<arbitrary>], iteration_bounds = array<i64: 1, 1>, scalar_prefetch = 0 : i64, scratch_operands = 0 : i64, tpu.core_type = #tpu.core_type<tc>, window_params = [{transform_indices = @transform_0, window_bounds = array<i64: 16, 32>}, {pipeline_mode = #tpu.pipeline_mode<synchronous>, transform_indices = @transform_1, window_bounds = array<i64: 32, 16>}, {transform_indices = @transform_2, window_bounds = array<i64: 1, 16, 16>}]} {
    %c0_i32 = arith.constant 0 : i32
    %0 = arith.cmpi eq, %arg1, %c0_i32 : i32
    %1 = arith.extui %0 : i1 to i32
    %c0_i32_0 = arith.constant 0 : i32
    %2 = arith.cmpi ne, %1, %c0_i32_0 : i32
    scf.if %2 {
      %cst_11 = arith.constant 0.000000e+00 : f32
      %13 = vector.broadcast %cst_11 : f32 to vector<1x16x16xf32>
      %c0_12 = arith.constant 0 : index
      %c0_13 = arith.constant 0 : index
      %c0_14 = arith.constant 0 : index
      %14 = vector.load %arg4[%c0_12, %c0_13, %c0_14] : memref<1x16x16xf32, #tpu.memory_space<vmem>>, vector<1x16x16xf32>
      tpu.vector_store %arg4[%c0_12, %c0_13, %c0_14], %13 {strides = array<i32>} : memref<1x16x16xf32, #tpu.memory_space<vmem>>, vector<1x16x16xf32>,
    } else {
    }
    %c0 = arith.constant 0 : index
    %c0_1 = arith.constant 0 : index
    %3 = vector.load %arg2[%c0, %c0_1] : memref<16x32xf32, #tpu.memory_space<vmem>>, vector<16x32xf32>
    %c0_2 = arith.constant 0 : index
    %c0_3 = arith.constant 0 : index
    %4 = vector.load %arg3[%c0_2, %c0_3] : memref<32x16xf32, #tpu.memory_space<vmem>>, vector<32x16xf32>
    %cst = arith.constant dense<0.000000e+00> : vector<16x16xf32>
    %5 = tpu.matmul %3, %4, %cst {dimension_numbers = #tpu.dot_dimension_numbers<[1], [0], [0], [1], [0, 0, 1, 1], [], []>} : vector<16x32xf32>, vector<32x16xf32>, vector<16x16xf32> -> vector<16x16xf32>
    %c0_4 = arith.constant 0 : index
    %c0_5 = arith.constant 0 : index
    %c0_6 = arith.constant 0 : index
    %6 = vector.load %arg4[%c0_4, %c0_5, %c0_6] : memref<1x16x16xf32, #tpu.memory_space<vmem>>, vector<1x16x16xf32>
    %7 = vector.shape_cast %6 : vector<1x16x16xf32> to vector<16x16xf32>
    %cst_7 = arith.constant dense<0.000000e+00> : vector<16x16xf32>
    %8 = tpu.matmul %5, %5, %cst_7 {dimension_numbers = #tpu.dot_dimension_numbers<[0], [0], [1], [1], [0, 1, 1, 1], [], []>} : vector<16x16xf32>, vector<16x16xf32>, vector<16x16xf32> -> vector<16x16xf32>
    %9 = arith.addf %7, %8 : vector<16x16xf32>
    %c0_8 = arith.constant 0 : index
    %c0_9 = arith.constant 0 : index
    %c0_10 = arith.constant 0 : index
    %10 = vector.load %arg4[%c0_8, %c0_9, %c0_10] : memref<1x16x16xf32, #tpu.memory_space<vmem>>, vector<1x16x16xf32>
    %11 = vector.shape_cast %10 : vector<1x16x16xf32> to vector<16x16xf32>
    %12 = vector.shape_cast %9 : vector<16x16xf32> to vector<1x16x16xf32>
    tpu.vector_store %arg4[%c0_8, %c0_9, %c0_10], %12 {strides = array<i32>} : memref<1x16x16xf32, #tpu.memory_space<vmem>>, vector<1x16x16xf32>,
    return
  }
  func.func @transform_0(%arg0: i32, %arg1: i32) -> (i32, i32) {
    %c1_i32 = arith.constant 1 : i32
    %0 = arith.muli %arg0, %c1_i32 : i32
    %1 = arith.addi %0, %arg1 : i32
    %c0_i32 = arith.constant 0 : i32
    %c0_i32_0 = arith.constant 0 : i32
    return %1, %c0_i32 : i32, i32
  }
  func.func @transform_1(%arg0: i32, %arg1: i32) -> (i32, i32) {
    %c0_i32 = arith.constant 0 : i32
    %c0_i32_0 = arith.constant 0 : i32
    %c0_i32_1 = arith.constant 0 : i32
    return %c0_i32, %c0_i32_0 : i32, i32
  }
  func.func @transform_2(%arg0: i32, %arg1: i32) -> (i32, i32, i32) {
    %c0_i32 = arith.constant 0 : i32
    %c0_i32_0 = arith.constant 0 : i32
    %c0_i32_1 = arith.constant 0 : i32
    return %arg0, %c0_i32, %c0_i32_0 : i32, i32, i32
  }
}

</mosaic_0001>

<bundles_post_ra>
// kernel: tpu_custom_call.1
= control target key start
LH: loop header
LB: loop body
LE: loop exit
PB: predicated region body
PF: predicated region fallthrough
CT: control target
= control target key end

     0   :  { %vm47_vm0 = vcmask 261120   ;;  %s398_s0 = inlined_call_operand.vmem [shape: f32[16,32], index: 0, kind: input, shape index: {}]   ;;  %s399_s1 = inlined_call_operand.vmem [shape: f32[32,16], index: 1, kind: input, shape index: {}]   ;;  %s400_s2 = inlined_call_operand.hbm [shape: f32[1,16,16], index: 2, kind: output, shape index: {}]  }
   0x1   :  { %v43_v0 = vld [vmem:[%s399_s1] sm:$0xff]  ;;  %v44_v1 = vld [vmem:[%s399_s1 + $0x8] sm:$0xff]  ;;  %v45_v2 = vld [vmem:[%s399_s1 + $0x10] sm:$0xff] }
   0x2   :  { %v303_v3 = vpack.c.bf16 %v44_v1, %v43_v0  ;;  %v46_v4 = vld [vmem:[%s399_s1 + $0x18] sm:$0xff]  ;;  %v41_v5 = vld [vmem:[%s398_s0] sm:$0xff] }
   0x3   :  { %v307_v6 = vpack.c.bf16 %v46_v4, %v45_v2  ;;  %293 = vmatprep.mubr.msk.f32.mxu0 %vm47_vm0, %v41_v5 }
   0x4   :  { %7 = vsyncpa [#allocation3], 0  ;;  %304 = vmatprep.subr.bf16.mxu0 %v303_v3  ;;  %v42_v7 = vld [vmem:[%s398_s0 + $0x8] sm:$0xff]  ;;  %vm38_vm1 = vcmask 130048   ;;  %v343_v11 = vmov 0.0   ;;  %s344_s0 = smov [#allocation2]  }
   0x5   :  { %306 = vmatpush3.bf16.msra.mxu0 %v303_v3  ;;  %40 = vst.msk [vmem:[#allocation2 + $0x8] sm:$0xff] %vm38_vm1, %v343_v11  ;;  %39 = vst.msk [vmem:[#allocation2] sm:$0xff] %vm38_vm1, %v343_v11  ;;  %s254_s1 = sshll.u32 %s344_s0, 4  ;;  %s255_s1 = int_to_ptr.vmem [resolvable:$true] %s254_s1 }
   0x6   :  { %308 = vmatprep.subr.bf16.mxu0 %v307_v6  ;;  %s319_s21 = scalar_lea.vmem %s255_s1, 256  ;;  %p324_p1 = scmp.lt.s32.totalorder %s255_s1, %s255_s1 }
   0x7   :  { %p320_p0 = scmp.ne.s32.totalorder %s255_s1, %s319_s21  ;;  %p325_p2 = scmp.lt.s32.totalorder %s319_s21, %s319_s21 }
   0x9   :  { %310 = vmatpush3.bf16.msra.mxu0 %v307_v6  ;;  %p326_p3 = por %p325_p2, %p324_p1 }
   0xb   :  { %p327_p4 = pnand %p326_p3, %p320_p0 }
   0xc   :  { %294 = vmatmul.mubr.msk.f32.vlgmr.msra.gmra.mrb[0].mxu0 %vm47_vm0, %v42_v7  ;;  %v130_v14 = vld [vmem:[#allocation2 + $0x8] sm:$0xff]  ;;  %v129_v15 = vld [vmem:[#allocation2] sm:$0xff] }
  0xdf   :  { %v295_v8 = vpop.f32.mrb[0].mxu0 }
  0xe0   :  { %v120_v9 = vpop.f32.mrb[1].mxu0 }
  0xe1   :  { %v311_v10 = vpack.c.bf16 %v295_v8, %v120_v9  ;;  %131 = vxpose.xlu0.b32.start [1/2] (short) (narrow) %v120_v9, 16 }
  0xe3   :  { %312 = vmatprep.subr.bf16.mxu1 %v311_v10 }
  0xe4   :  { %314 = vmatpush3.bf16.msra.mxu1 %v311_v10 }
  0xe5   :  { %132 = vxpose.xlu0.b32.end [2/2] (short) (narrow) %v295_v8, 16 }
 0x161   :  { %v147_v12 = vpop.trf.xlu0 }
 0x162   :  { %300 = vmatprep.mubr.msk.f32.mxu1 %vm38_vm1, %v147_v12 }
 0x165   :  { %v148_v13 = vpop.trf.xlu0 }
 0x166   :  { %301 = vmatmul.mubr.msk.f32.vlgmr.msra.gmra.mrb[0].mxu1 %vm38_vm1, %v148_v13 }
 0x239   :  { %v302_v16 = vpop.f32.mrb[0].mxu1 }
 0x23a   :  { %v246_v17 = vadd.f32 %v302_v16, %v130_v14  ;;  %v236_v18 = vpop.f32.mrb[1].mxu1 }
 0x23b   :  { %v245_v19 = vadd.f32 %v236_v18, %v129_v15 }
 0x23c   :  { %248 = vst.msk [vmem:[#allocation2 + $0x8] sm:$0xff] %vm38_vm1, %v246_v17 }
 0x23d   :  { %247 = vst.msk [vmem:[#allocation2] sm:$0xff] %vm38_vm1, %v245_v19 }
 0x23e   :  { %330 = shalt.err (!%p327_p4)
}
 0x23f   :  { %s331_s24 = scalar_lea.hbm %s400_s2, 256 }
 0x240   :  { %p332_p5 = scmp.ne.s32.totalorder %s400_s2, %s331_s24  ;;  %p335_p6 = scmp.lt.u32.totalorder %s331_s24, %s400_s2 }
 0x242   :  { %p337_p7 = pnand %p335_p6, %p332_p5 }
 0x244   :  { %340 = shalt.err (!%p337_p7)
}
 0x245   :  { %s345_s29 = smov 128   ;;  %s346_s30 = smov 8  }
 0x246   :  { %260 = dma.vmem_to_hbm [thread:$0]  %s255_s1, 256, %s400_s2, [#allocation3], %s345_s29, %s345_s29, %s346_s30  }
 0x247   :  { %341 = dma.done.wait [#allocation3], 256  }
 0x248   :  { %342 = vsyncadd [#allocation3], 4294967040 }
 0x249   :  { %264 = vsyncpa [#allocation3], 1 }

</bundles_post_ra>
